<compile_context>
chip_gen: v5e
topology: v5e:2x2
jax: 0.10.0
libtpu: 0.0.40
codegen_flags: <defaults>
</compile_context>

<pallas_src>
import functools

import jax
import jax.numpy as jnp
import numpy as np
from jax.experimental import pallas as pl
from jax.experimental.pallas import tpu as pltpu


def _round_up(x, m):
    return ((x + m - 1) // m) * m


def _knw_cell_kernel(*refs, lsize, kp, lp, has_plogits):
    """One batch tile: fused x-matmul, mask matmul, log-softmax, hidden update."""
    if has_plogits:
        x_ref, h_ref, plog_ref, w_xr_ref, mask_ref, out_ref, hnew_ref = refs
    else:
        x_ref, h_ref, w_xr_ref, mask_ref, out_ref, hnew_ref = refs
        plog_ref = None

    x = x_ref[...]                                             # (TB, Lp) f32

    # Fused (actmat | resetmat) matmul: one MXU pass over the shared LHS x.
    w_xr = w_xr_ref[...].astype(jnp.float32)                   # (Lp, 2*Kp)
    xw = jnp.dot(x, w_xr, preferred_element_type=jnp.float32)  # (TB, 2*Kp)

    knw_act = xw[:, :kp] + h_ref[...]                          # (TB, Kp)
    resetter = xw[:, kp:]                                      # (TB, Kp)

    # knw_para is pre-folded into mask_ref, so no per-tile scaling needed.
    knw_vec = jnp.dot(knw_act, mask_ref[...],
                      preferred_element_type=jnp.float32)      # (TB, Lp)
    if has_plogits:
        knw_vec = knw_vec + plog_ref[...]

    # Mask padded logit lanes so they do not perturb the log-softmax.
    if lsize != lp:
        lane = jax.lax.broadcasted_iota(jnp.int32, knw_vec.shape, 1)
        knw_vec = jnp.where(lane < lsize, knw_vec, jnp.float32(-1e30))

    # Numerically stable log-softmax over the (padded) last axis.
    m = jnp.max(knw_vec, axis=-1, keepdims=True)
    shifted = knw_vec - m
    lse = jnp.log(jnp.sum(jnp.exp(shifted), axis=-1, keepdims=True))
    out_ref[...] = shifted - lse

    # New hidden state.
    hnew_ref[...] = knw_act * resetter


def prepare_knw_params(actmat, maskmat, resetmat, para):
    """One-time host-side parameter prep: pad, fuse act/reset, fold para."""
    lsize, knw_size = actmat.shape                    # actmat is (L, K)
    lp = _round_up(lsize, 128)
    kp = _round_up(knw_size, 128)

    act_p = jnp.pad(jnp.asarray(actmat, jnp.float32),
                    ((0, lp - lsize), (0, kp - knw_size)))
    reset_p = jnp.pad(jnp.asarray(resetmat, jnp.float32),
                      ((0, lp - lsize), (0, kp - knw_size)))
    # Binary {0,1} weights -> bf16 is exact; halves resident weight bytes.
    w_xr = jnp.concatenate([act_p, reset_p], axis=1).astype(jnp.bfloat16)

    # Fold knw_para into the mask matrix (kept f32 so arbitrary para is exact).
    mm = (jnp.asarray(para, jnp.float32).reshape(knw_size, 1)
          * jnp.asarray(maskmat, jnp.float32))
    maskmat_scaled = jnp.pad(mm, ((0, kp - knw_size), (0, lp - lsize)))

    return w_xr, maskmat_scaled


def _pick_batch_tile(B, lp, kp, has_plogits):
    """Largest batch tile (multiple of 8, <=512) fitting a 32 MiB VMEM budget."""
    budget = 32 * 1024 * 1024
    # Resident weights (bf16 fused act|reset + f32 para-folded mask),
    # conservatively assume double-buffered by the pipeline.
    weight_bytes = 2 * (2 * lp * 2 * kp + 4 * kp * lp)
    per_row = 4 * ((3 if has_plogits else 2) * lp + 2 * kp)    # streamed f32
    avail = max(budget - weight_bytes, 0)
    tb_cap = (avail // (2 * per_row)) // 8 * 8                 # double-buffered
    tb_cap = max(8, tb_cap)
    return int(min(512, tb_cap, _round_up(B, 8)))


@jax.jit
def _knw_cell_forward_padded(x2, h2, p2, w_xr, maskmat_scaled):
    """Core jitted path on flattened (B, L)/(B, K) arrays. p2 may be None."""
    B, lsize = x2.shape
    knw_size = h2.shape[-1]
    lp = w_xr.shape[0]
    kp = w_xr.shape[1] // 2
    has_plogits = p2 is not None

    tb = _pick_batch_tile(B, lp, kp, has_plogits)
    bp = _round_up(B, tb)

    x_p = jnp.pad(x2, ((0, bp - B), (0, lp - lsize)))
    h_p = jnp.pad(h2, ((0, bp - B), (0, kp - knw_size)))

    grid = (bp // tb,)

    kernel = functools.partial(_knw_cell_kernel, lsize=lsize, kp=kp, lp=lp,
                               has_plogits=has_plogits)

    in_specs = [
        pl.BlockSpec((tb, lp), lambda i: (i, 0)),              # x (streamed)
        pl.BlockSpec((tb, kp), lambda i: (i, 0)),              # hidden
    ]
    operands = [x_p, h_p]
    if has_plogits:
        p_p = jnp.pad(p2, ((0, bp - B), (0, lp - lsize)))
        in_specs.append(pl.BlockSpec((tb, lp), lambda i: (i, 0)))  # plogits
        operands.append(p_p)
    in_specs += [
        pl.BlockSpec((lp, 2 * kp), lambda i: (0, 0)),          # fused act|reset (resident)
        pl.BlockSpec((kp, lp), lambda i: (0, 0)),              # para-folded mask (resident)
    ]
    operands += [w_xr, maskmat_scaled]

    # Advisory cost estimate (flops of the two matmuls + exp count + bytes).
    n_streams = (3 if has_plogits else 2) * lp + 2 * kp
    cost = pl.CostEstimate(
        flops=int(2 * bp * lp * 2 * kp + 2 * bp * kp * lp),
        transcendentals=int(bp * lp + bp),
        bytes_accessed=int(4 * bp * n_streams + 2 * lp * 2 * kp + 4 * kp * lp),
    )

    out_p, hnew_p = pl.pallas_call(
        kernel,
        out_shape=(
            jax.ShapeDtypeStruct((bp, lp), jnp.float32),
            jax.ShapeDtypeStruct((bp, kp), jnp.float32),
        ),
        grid=grid,
        in_specs=in_specs,
        out_specs=(
            pl.BlockSpec((tb, lp), lambda i: (i, 0)),          # log-softmax out
            pl.BlockSpec((tb, kp), lambda i: (i, 0)),          # new hidden
        ),
        compiler_params=pltpu.CompilerParams(
            dimension_semantics=("parallel",),
            vmem_limit_bytes=48 * 1024 * 1024,
        ),
        cost_estimate=cost,
    )(*operands)

    return out_p[:B, :lsize], hnew_p[:B, :knw_size]


def knw_cell_forward(inp, hidden, prepared_params, plogits=None):
    """Public wrapper: handles leading dims and the plogits=None path.

    inp:     (..., lsize)     float-like
    hidden:  (..., knw_size)  float-like
    plogits: (..., lsize) or None
    prepared_params: output of prepare_knw_params (fold/pad done once).
    """
    w_xr, maskmat_scaled = prepared_params
    lsize = inp.shape[-1]
    knw_size = hidden.shape[-1]
    lead_shape = inp.shape[:-1]

    x2 = jnp.asarray(inp, jnp.float32).reshape(-1, lsize)
    h2 = jnp.asarray(hidden, jnp.float32).reshape(-1, knw_size)
    p2 = (None if plogits is None
          else jnp.asarray(plogits, jnp.float32).reshape(-1, lsize))

    out, hnew = _knw_cell_forward_padded(x2, h2, p2, w_xr, maskmat_scaled)
    return (out.reshape(*lead_shape, lsize),
            hnew.reshape(*lead_shape, knw_size))


def _reference_forward(inp, hidden, actmat, maskmat, resetmat, para, plogits):
    """Pure-numpy reference mirroring the PyTorch forward."""
    knw_act = inp @ actmat + hidden
    scaled = knw_act * para
    knw_vec = scaled @ maskmat
    if plogits is not None:
        knw_vec = knw_vec + plogits
    m = knw_vec.max(axis=-1, keepdims=True)
    sh = knw_vec - m
    logsm = sh - np.log(np.exp(sh).sum(axis=-1, keepdims=True))
    resetter = inp @ resetmat
    return logsm, knw_act * resetter


if __name__ == "__main__":
    # Small, deterministic synthetic setup matching the module's conventions.
    lsize = 16       # vocabulary / logit size
    knw_size = 4     # number of knowledge cells
    batch = 2

    key = jax.random.PRNGKey(0)
    k_in, k_hid, k_mask, k_act, k_reset, k_plog = jax.random.split(key, 6)

    # Parameters (structure mirroring __init__):
    knw_para = jnp.ones((knw_size,), dtype=jnp.float32)
    knw_maskmat = jax.random.bernoulli(
        k_mask, 0.5, (knw_size, lsize)).astype(jnp.float32)
    knw_actmat = jax.random.bernoulli(
        k_act, 0.3, (lsize, knw_size)).astype(jnp.float32)
    knw_resetmat = jax.random.bernoulli(
        k_reset, 0.5, (lsize, knw_size)).astype(jnp.float32)

    prepared = prepare_knw_params(knw_actmat, knw_maskmat, knw_resetmat,
                                  knw_para)

    # Inputs: module convention is (1, batch, lsize) / (1, batch, knw_size).
    x = jax.random.normal(k_in, (1, batch, lsize), dtype=jnp.float32)
    hidden = jax.random.normal(k_hid, (1, batch, knw_size), dtype=jnp.float32)
    plogits = jax.random.normal(k_plog, (1, batch, lsize), dtype=jnp.float32)

    out, new_hidden = knw_cell_forward(x, hidden, prepared, plogits)
    out = jax.block_until_ready(out)
    new_hidden = jax.block_until_ready(new_hidden)

    # Check against numpy reference (with plogits).
    ref_out, ref_hidden = _reference_forward(
        np.asarray(x), np.asarray(hidden), np.asarray(knw_actmat),
        np.asarray(knw_maskmat), np.asarray(knw_resetmat),
        np.asarray(knw_para), np.asarray(plogits))
    np.testing.assert_allclose(np.asarray(out), ref_out, rtol=1e-5, atol=1e-5)
    np.testing.assert_allclose(np.asarray(new_hidden), ref_hidden,
                               rtol=1e-5, atol=1e-5)

    # Also exercise the plogits=None path (specialized kernel, no prior DMA).
    out2, hid2 = knw_cell_forward(x, hidden, prepared, None)
    out2 = jax.block_until_ready(out2)
    hid2 = jax.block_until_ready(hid2)
    ref_out2, ref_hidden2 = _reference_forward(
        np.asarray(x), np.asarray(hidden), np.asarray(knw_actmat),
        np.asarray(knw_maskmat), np.asarray(knw_resetmat),
        np.asarray(knw_para), None)
    np.testing.assert_allclose(np.asarray(out2), ref_out2,
                               rtol=1e-5, atol=1e-5)
    np.testing.assert_allclose(np.asarray(hid2), ref_hidden2,
                               rtol=1e-5, atol=1e-5)

    print("KERNEL_OK")
</pallas_src>

<mosaic_0001>
module attributes {stable_mosaic.version = 11 : i64} {
  func.func @_knw_cell_kernel(%arg0: i32, %arg1: memref<8x128xf32, #tpu.memory_space<vmem>>, %arg2: memref<8x128xf32, #tpu.memory_space<vmem>>, %arg3: memref<8x128xf32, #tpu.memory_space<vmem>>, %arg4: memref<128x256xbf16, #tpu.memory_space<vmem>>, %arg5: memref<128x128xf32, #tpu.memory_space<vmem>>, %arg6: memref<8x128xf32, #tpu.memory_space<vmem>>, %arg7: memref<8x128xf32, #tpu.memory_space<vmem>>) attributes {dimension_semantics = [#tpu.dimension_semantics<parallel>], iteration_bounds = array<i64: 1>, scalar_prefetch = 0 : i64, scratch_operands = 0 : i64, tpu.core_type = #tpu.core_type<tc>, window_params = [{transform_indices = @transform_0, window_bounds = array<i64: 8, 128>}, {transform_indices = @transform_1, window_bounds = array<i64: 8, 128>}, {transform_indices = @transform_2, window_bounds = array<i64: 8, 128>}, {pipeline_mode = #tpu.pipeline_mode<synchronous>, transform_indices = @transform_3, window_bounds = array<i64: 128, 256>}, {pipeline_mode = #tpu.pipeline_mode<synchronous>, transform_indices = @transform_4, window_bounds = array<i64: 128, 128>}, {transform_indices = @transform_5, window_bounds = array<i64: 8, 128>}, {transform_indices = @transform_6, window_bounds = array<i64: 8, 128>}]} {
    %c0 = arith.constant 0 : index
    %c0_0 = arith.constant 0 : index
    %0 = vector.load %arg1[%c0, %c0_0] : memref<8x128xf32, #tpu.memory_space<vmem>>, vector<8x128xf32>
    %c0_1 = arith.constant 0 : index
    %c0_2 = arith.constant 0 : index
    %1 = vector.load %arg4[%c0_1, %c0_2] : memref<128x256xbf16, #tpu.memory_space<vmem>>, vector<128x256xbf16>
    %2 = arith.extf %1 : vector<128x256xbf16> to vector<128x256xf32>
    %cst = arith.constant dense<0.000000e+00> : vector<8x256xf32>
    %3 = tpu.matmul %0, %2, %cst {dimension_numbers = #tpu.dot_dimension_numbers<[1], [0], [0], [1], [0, 0, 1, 1], [], []>} : vector<8x128xf32>, vector<128x256xf32>, vector<8x256xf32> -> vector<8x256xf32>
    %4 = vector.extract_strided_slice %3 {offsets = [0, 0], sizes = [8, 128], strides = [1, 1]} : vector<8x256xf32> to vector<8x128xf32>
    %c0_3 = arith.constant 0 : index
    %c0_4 = arith.constant 0 : index
    %5 = vector.load %arg2[%c0_3, %c0_4] : memref<8x128xf32, #tpu.memory_space<vmem>>, vector<8x128xf32>
    %6 = arith.addf %4, %5 : vector<8x128xf32>
    %7 = vector.extract_strided_slice %3 {offsets = [0, 128], sizes = [8, 128], strides = [1, 1]} : vector<8x256xf32> to vector<8x128xf32>
    %c0_5 = arith.constant 0 : index
    %c0_6 = arith.constant 0 : index
    %8 = vector.load %arg5[%c0_5, %c0_6] : memref<128x128xf32, #tpu.memory_space<vmem>>, vector<128x128xf32>
    %cst_7 = arith.constant dense<0.000000e+00> : vector<8x128xf32>
    %9 = tpu.matmul %6, %8, %cst_7 {dimension_numbers = #tpu.dot_dimension_numbers<[1], [0], [0], [1], [0, 0, 1, 1], [], []>} : vector<8x128xf32>, vector<128x128xf32>, vector<8x128xf32> -> vector<8x128xf32>
    %c0_8 = arith.constant 0 : index
    %c0_9 = arith.constant 0 : index
    %10 = vector.load %arg3[%c0_8, %c0_9] : memref<8x128xf32, #tpu.memory_space<vmem>>, vector<8x128xf32>
    %11 = arith.addf %9, %10 : vector<8x128xf32>
    %12 = tpu.iota {dimensions = array<i32: 1>} : vector<8x128xi32>
    %c16_i32 = arith.constant 16 : i32
    %13 = vector.broadcast %c16_i32 : i32 to vector<8x128xi32>
    %14 = arith.cmpi slt, %12, %13 : vector<8x128xi32>
    %cst_10 = arith.constant -1.000000e+30 : f32
    %15 = vector.broadcast %cst_10 : f32 to vector<8x128xf32>
    %16 = arith.select %14, %11, %15 : vector<8x128xi1>, vector<8x128xf32>
    %cst_11 = arith.constant dense<0xFF800000> : vector<8xf32>
    %17 = vector.multi_reduction <maximumf>, %16, %cst_11 [1] : vector<8x128xf32> to vector<8xf32>
    %18 = vector.shape_cast %17 : vector<8xf32> to vector<8x1xf32>
    %19 = vector.broadcast %18 : vector<8x1xf32> to vector<8x128xf32>
    %20 = arith.subf %16, %19 : vector<8x128xf32>
    %21 = math.exp %20 : vector<8x128xf32>
    %cst_12 = arith.constant dense<0.000000e+00> : vector<8xf32>
    %22 = vector.multi_reduction <add>, %21, %cst_12 [1] : vector<8x128xf32> to vector<8xf32>
    %23 = vector.shape_cast %22 : vector<8xf32> to vector<8x1xf32>
    %24 = math.log %23 : vector<8x1xf32>
    %25 = vector.broadcast %24 : vector<8x1xf32> to vector<8x128xf32>
    %26 = arith.subf %20, %25 : vector<8x128xf32>
    %c0_13 = arith.constant 0 : index
    %c0_14 = arith.constant 0 : index
    %27 = vector.load %arg6[%c0_13, %c0_14] : memref<8x128xf32, #tpu.memory_space<vmem>>, vector<8x128xf32>
    tpu.vector_store %arg6[%c0_13, %c0_14], %26 {strides = array<i32>} : memref<8x128xf32, #tpu.memory_space<vmem>>, vector<8x128xf32>,
    %28 = arith.mulf %6, %7 : vector<8x128xf32>
    %c0_15 = arith.constant 0 : index
    %c0_16 = arith.constant 0 : index
    %29 = vector.load %arg7[%c0_15, %c0_16] : memref<8x128xf32, #tpu.memory_space<vmem>>, vector<8x128xf32>
    tpu.vector_store %arg7[%c0_15, %c0_16], %28 {strides = array<i32>} : memref<8x128xf32, #tpu.memory_space<vmem>>, vector<8x128xf32>,
    return
  }
  func.func @transform_0(%arg0: i32) -> (i32, i32) {
    %c0_i32 = arith.constant 0 : i32
    %c0_i32_0 = arith.constant 0 : i32
    return %arg0, %c0_i32 : i32, i32
  }
  func.func @transform_1(%arg0: i32) -> (i32, i32) {
    %c0_i32 = arith.constant 0 : i32
    %c0_i32_0 = arith.constant 0 : i32
    return %arg0, %c0_i32 : i32, i32
  }
  func.func @transform_2(%arg0: i32) -> (i32, i32) {
    %c0_i32 = arith.constant 0 : i32
    %c0_i32_0 = arith.constant 0 : i32
    return %arg0, %c0_i32 : i32, i32
  }
  func.func @transform_3(%arg0: i32) -> (i32, i32) {
    %c0_i32 = arith.constant 0 : i32
    %c0_i32_0 = arith.constant 0 : i32
    %c0_i32_1 = arith.constant 0 : i32
    return %c0_i32, %c0_i32_0 : i32, i32
  }
  func.func @transform_4(%arg0: i32) -> (i32, i32) {
    %c0_i32 = arith.constant 0 : i32
    %c0_i32_0 = arith.constant 0 : i32
    %c0_i32_1 = arith.constant 0 : i32
    return %c0_i32, %c0_i32_0 : i32, i32
  }
  func.func @transform_5(%arg0: i32) -> (i32, i32) {
    %c0_i32 = arith.constant 0 : i32
    %c0_i32_0 = arith.constant 0 : i32
    return %arg0, %c0_i32 : i32, i32
  }
  func.func @transform_6(%arg0: i32) -> (i32, i32) {
    %c0_i32 = arith.constant 0 : i32
    %c0_i32_0 = arith.constant 0 : i32
    return %arg0, %c0_i32 : i32, i32
  }
}

</mosaic_0001>

<bundles_post_ra>
// kernel: _knw_cell_forward_padded.1
= control target key start
LH: loop header
LB: loop body
LE: loop exit
PB: predicated region body
PF: predicated region fallthrough
CT: control target
= control target key end

     0   :  { %12 = vsyncpa [#allocation3], 0  ;;  %s329_s0 = inlined_call_operand.vmem [shape: f32[8,128], index: 0, kind: input, shape index: {}]   ;;  %s330_s1 = inlined_call_operand.vmem [shape: f32[8,128], index: 1, kind: input, shape index: {}]   ;;  %s331_s2 = inlined_call_operand.vmem [shape: f32[8,128], index: 2, kind: input, shape index: {}]   ;;  %s332_s3 = inlined_call_operand.hbm [shape: bf16[128,256], index: 3, kind: input, shape index: {}]   ;;  %s333_s4 = inlined_call_operand.hbm [shape: f32[128,128], index: 4, kind: input, shape index: {}]   ;;  %s334_s5 = inlined_call_operand.vmem [shape: f32[8,128], index: 5, kind: output, shape index: {0}]   ;;  %s335_s6 = inlined_call_operand.vmem [shape: f32[8,128], index: 6, kind: output, shape index: {1}]  }
   0x1   :  { %s24_s23 = sshll.u32 %s332_s3, 4  ;;  %s25_s23 = int_to_ptr.hbm [resolvable:$true] %s24_s23 }
   0x2   :  { %13 = vsyncpa [#allocation5], 0  ;;  %s269_s24 = smov [#allocation2]   ;;  %s37_s28 = sshll.u32 %s333_s4, 4  ;;  %s38_s28 = int_to_ptr.hbm [resolvable:$true] %s37_s28 }
   0x3   :  { %s26_s25 = sshll.u32 %s269_s24, 4  ;;  %s270_s29 = smov 128   ;;  %s27_s25 = int_to_ptr.vmem [resolvable:$true] %s26_s25 }
   0x4   :  { %s271_s30 = smov 8   ;;  %s272_s7 = smov [#allocation4]  }
   0x5   :  { %32 = dma.hbm_to_vmem [thread:$0]  %s25_s23, 2048, %s27_s25, [#allocation3], %s270_s29, %s270_s29, %s271_s30  }
   0x6   :  { %s39_s8 = sshll.u32 %s272_s7, 4  ;;  %s40_s8 = int_to_ptr.vmem [resolvable:$true] %s39_s8 }
   0x7   :  { %45 = dma.hbm_to_vmem [thread:$0]  %s38_s28, 2048, %s40_s8, [#allocation5], %s270_s29, %s270_s29, %s271_s30  }
   0x8   :  { %265 = dma.done.wait [#allocation3], 2048  }
   0x9   :  { %266 = vsyncadd [#allocation3], 4294965248 }
   0xa   :  { %267 = dma.done.wait [#allocation5], 2048  }
   0xb   :  { %268 = vsyncadd [#allocation5], 4294965248  ;;  %v70_v0 = vld [vmem:[#allocation2 + $0x78] sm:$0xff]  ;;  %v69_v1 = vld [vmem:[#allocation2 + $0x70] sm:$0xff] }
   0xc   :  { %v68_v2 = vld [vmem:[#allocation2 + $0x68] sm:$0xff]  ;;  %v101_v3 = vunpack.c.l.bf16 %v70_v0  ;;  %v99_v4 = vunpack.c.l.bf16 %v69_v1  ;;  %v102_v5 = vunpack.c.h.bf16 %v70_v0  ;;  %v100_v6 = vunpack.c.h.bf16 %v69_v1  ;;  %v67_v7 = vld [vmem:[#allocation2 + $0x60] sm:$0xff]  ;;  %v66_v10 = vld [vmem:[#allocation2 + $0x58] sm:$0xff] }
   0xd   :  { %v97_v8 = vunpack.c.l.bf16 %v68_v2  ;;  %v98_v9 = vunpack.c.h.bf16 %v68_v2  ;;  %v95_v11 = vunpack.c.l.bf16 %v67_v7  ;;  %v96_v12 = vunpack.c.h.bf16 %v67_v7  ;;  %v160_v13 = vld [vmem:[#allocation4 + $0x78] sm:$0xff]  ;;  %v65_v14 = vld [vmem:[#allocation2 + $0x50] sm:$0xff]  ;;  %v158_v18 = vld [vmem:[#allocation4 + $0x68] sm:$0xff] }
   0xe   :  { %103 = vmatpush.msra.mxu0 %v101_v3  ;;  %123 = vmatpush.msra.mxu1 %v102_v5  ;;  %v159_v15 = vld [vmem:[#allocation4 + $0x70] sm:$0xff]  ;;  %v93_v16 = vunpack.c.l.bf16 %v66_v10  ;;  %v94_v17 = vunpack.c.h.bf16 %v66_v10  ;;  %v64_v19 = vld [vmem:[#allocation2 + $0x48] sm:$0xff]  ;;  %v91_v20 = vunpack.c.l.bf16 %v65_v14  ;;  %v92_v21 = vunpack.c.h.bf16 %v65_v14  ;;  %v157_v22 = vld [vmem:[#allocation4 + $0x60] sm:$0xff] }
   0xf   :  { %162 = vmatpush.msra.mxu2 %v160_v13  ;;  %v63_v23 = vld [vmem:[#allocation2 + $0x40] sm:$0xff]  ;;  %v89_v24 = vunpack.c.l.bf16 %v64_v19  ;;  %v90_v25 = vunpack.c.h.bf16 %v64_v19  ;;  %v156_v26 = vld [vmem:[#allocation4 + $0x58] sm:$0xff]  ;;  %v155_v30 = vld [vmem:[#allocation4 + $0x50] sm:$0xff] }
  0x10   :  { %104 = vmatpush.msra.mxu0 %v99_v4  ;;  %124 = vmatpush.msra.mxu1 %v100_v6  ;;  %v62_v27 = vld [vmem:[#allocation2 + $0x38] sm:$0xff]  ;;  %v87_v28 = vunpack.c.l.bf16 %v63_v23  ;;  %v88_v29 = vunpack.c.h.bf16 %v63_v23  ;;  %v61_v31 = vld [vmem:[#allocation2 + $0x30] sm:$0xff]  ;;  %v154_v34 = vld [vmem:[#allocation4 + $0x48] sm:$0xff]  ;;  %v182_v6 = vlaneseq }
  0x11   :  { %163 = vmatpush.msra.mxu2 %v159_v15  ;;  %v85_v32 = vunpack.c.l.bf16 %v62_v27  ;;  %v86_v33 = vunpack.c.h.bf16 %v62_v27  ;;  %v60_v35 = vld [vmem:[#allocation2 + $0x28] sm:$0xff]  ;;  %v83_v36 = vunpack.c.l.bf16 %v61_v31  ;;  %v84_v37 = vunpack.c.h.bf16 %v61_v31  ;;  %v153_v38 = vld [vmem:[#allocation4 + $0x40] sm:$0xff]  ;;  %v152_v42 = vld [vmem:[#allocation4 + $0x38] sm:$0xff] }
  0x12   :  { %105 = vmatpush.msra.mxu0 %v97_v8  ;;  %125 = vmatpush.msra.mxu1 %v98_v9  ;;  %v59_v39 = vld [vmem:[#allocation2 + $0x20] sm:$0xff]  ;;  %v81_v40 = vunpack.c.l.bf16 %v60_v35  ;;  %v82_v41 = vunpack.c.h.bf16 %v60_v35  ;;  %v58_v43 = vld [vmem:[#allocation2 + $0x18] sm:$0xff]  ;;  %v151_v46 = vld [vmem:[#allocation4 + $0x30] sm:$0xff]  ;;  %v183_v7 = vand.u32 127, %v182_v6 }
  0x13   :  { %164 = vmatpush.msra.mxu2 %v158_v18  ;;  %v79_v44 = vunpack.c.l.bf16 %v59_v39  ;;  %v80_v45 = vunpack.c.h.bf16 %v59_v39  ;;  %v57_v47 = vld [vmem:[#allocation2 + $0x10] sm:$0xff]  ;;  %v77_v48 = vunpack.c.l.bf16 %v58_v43  ;;  %v78_v49 = vunpack.c.h.bf16 %v58_v43  ;;  %v150_v50 = vld [vmem:[#allocation4 + $0x28] sm:$0xff]  ;;  %v149_v54 = vld [vmem:[#allocation4 + $0x20] sm:$0xff] }
  0x14   :  { %106 = vmatpush.msra.mxu0 %v95_v11  ;;  %126 = vmatpush.msra.mxu1 %v96_v12  ;;  %v56_v51 = vld [vmem:[#allocation2 + $0x8] sm:$0xff]  ;;  %v75_v52 = vunpack.c.l.bf16 %v57_v47  ;;  %v76_v53 = vunpack.c.h.bf16 %v57_v47  ;;  %v55_v55 = vld [vmem:[#allocation2] sm:$0xff]  ;;  %v148_v58 = vld [vmem:[#allocation4 + $0x18] sm:$0xff]  ;;  %vm184_vm0 = vcmp.lt.s32.totalorder %v183_v7, 16 }
  0x15   :  { %165 = vmatpush.msra.mxu2 %v157_v22  ;;  %v73_v56 = vunpack.c.l.bf16 %v56_v51  ;;  %v74_v57 = vunpack.c.h.bf16 %v56_v51  ;;  %v71_v59 = vunpack.c.l.bf16 %v55_v55  ;;  %v72_v60 = vunpack.c.h.bf16 %v55_v55  ;;  %v147_v61 = vld [vmem:[#allocation4 + $0x10] sm:$0xff]  ;;  %v54_v62 = vld [vmem:[%s329_s0] sm:$0xff]  ;;  %v146_v63 = vld [vmem:[#allocation4 + $0x8] sm:$0xff] }
  0x16   :  { %107 = vmatpush.msra.mxu0 %v93_v16  ;;  %127 = vmatpush.msra.mxu1 %v94_v17  ;;  %v145_v0 = vld [vmem:[#allocation4] sm:$0xff] }
  0x17   :  { %166 = vmatpush.msra.mxu2 %v156_v26  ;;  %v143_v1 = vld [vmem:[%s330_s1] sm:$0xff] }
  0x18   :  { %108 = vmatpush.msra.mxu0 %v91_v20  ;;  %128 = vmatpush.msra.mxu1 %v92_v21  ;;  %v161_v8 = vld [vmem:[%s331_s2] sm:$0xff] }
  0x19   :  { %167 = vmatpush.msra.mxu2 %v155_v30 }
  0x1a   :  { %109 = vmatpush.msra.mxu0 %v89_v24  ;;  %129 = vmatpush.msra.mxu1 %v90_v25 }
  0x1b   :  { %168 = vmatpush.msra.mxu2 %v154_v34 }
  0x1c   :  { %110 = vmatpush.msra.mxu0 %v87_v28  ;;  %130 = vmatpush.msra.mxu1 %v88_v29 }
  0x1d   :  { %169 = vmatpush.msra.mxu2 %v153_v38 }
  0x1e   :  { %111 = vmatpush.msra.mxu0 %v85_v32  ;;  %131 = vmatpush.msra.mxu1 %v86_v33 }
  0x1f   :  { %170 = vmatpush.msra.mxu2 %v152_v42 }
  0x20   :  { %112 = vmatpush.msra.mxu0 %v83_v36  ;;  %132 = vmatpush.msra.mxu1 %v84_v37 }
  0x21   :  { %171 = vmatpush.msra.mxu2 %v151_v46 }
  0x22   :  { %113 = vmatpush.msra.mxu0 %v81_v40  ;;  %133 = vmatpush.msra.mxu1 %v82_v41 }
  0x23   :  { %172 = vmatpush.msra.mxu2 %v150_v50 }
  0x24   :  { %114 = vmatpush.msra.mxu0 %v79_v44  ;;  %134 = vmatpush.msra.mxu1 %v80_v45 }
  0x25   :  { %173 = vmatpush.msra.mxu2 %v149_v54 }
  0x26   :  { %115 = vmatpush.msra.mxu0 %v77_v48  ;;  %135 = vmatpush.msra.mxu1 %v78_v49 }
  0x27   :  { %174 = vmatpush.msra.mxu2 %v148_v58 }
  0x28   :  { %116 = vmatpush.msra.mxu0 %v75_v52  ;;  %136 = vmatpush.msra.mxu1 %v76_v53 }
  0x29   :  { %175 = vmatpush.msra.mxu2 %v147_v61 }
  0x2a   :  { %117 = vmatpush.msra.mxu0 %v73_v56  ;;  %137 = vmatpush.msra.mxu1 %v74_v57 }
  0x2b   :  { %176 = vmatpush.msra.mxu2 %v146_v63 }
  0x2c   :  { %118 = vmatpush.msra.mxu0 %v71_v59  ;;  %138 = vmatpush.msra.mxu1 %v72_v60 }
  0x2d   :  { %119 = vmatmul.f32.vlgmr.msra.gmra.mxu0 %v54_v62  ;;  %139 = vmatmul.f32.vlgmr.msra.gmra.mxu1 %v54_v62 }
  0x2e   :  { %177 = vmatpush.msra.mxu2 %v145_v0 }
  0xaa   :  { %v120_v2 = vpop.f32.mrf.mxu0  ;;  %v140_v3 = vpop.f32.mrf.mxu1 }
  0xab   :  { %v144_v4 = vadd.f32 %v143_v1, %v120_v2 }
  0xad   :  { %v197_v5 = vmul.f32 %v144_v4, %v140_v3  ;;  %178 = vmatmul.f32.vlgmr.msra.gmra.mxu2 %v144_v4 }
  0xaf   :  { %198 = vst [vmem:[%s335_s6] sm:$0xff] %v197_v5 }
 0x130   :  { %v179_v9 = vpop.f32.mrf.mxu2 }
 0x131   :  { %v180_v10 = vadd.f32 %v179_v9, %v161_v8 }
 0x133   :  { %v185_v11 = vsel %vm184_vm0, %v180_v10, -1e+30 }
 0x134   :  { %186 = vmax.xlane.f32.xlu0 %v185_v11 }
 0x1a7   :  { %v187_v12 = vpop.xlane.xlu0 %186 }
 0x1a8   :  { %v188_v13 = vsub.f32 %v185_v11, %v187_v12 }
 0x1aa   :  { %v189_v14 = vmul.f32 1.442695, %v188_v13 }
 0x1ac   :  { %213 = vpow2.f32 %v189_v14 }
 0x1b2   :  { %v214_v15 = vpop.eup %213 }
 0x1b3   :  { %191 = vadd.xlane.f32.xlu0 %v214_v15 }
 0x226   :  { %v192_v16 = vpop.xlane.xlu0 %191 }
 0x227   :  { %215 = vlog2.f32 %v192_v16 }
 0x22d   :  { %v216_v17 = vpop.eup %215 }
 0x22e   :  { %v194_v18 = vmul.f32 0.6931472, %v216_v17 }
 0x230   :  { %v195_v19 = vsub.f32 %v188_v13, %v194_v18 }
 0x232   :  { %196 = vst [vmem:[%s334_s5] sm:$0xff] %v195_v19 }
 0x233   :  { %207 = vsyncpa [#allocation3], 1 }
 0x234   :  { %208 = vsyncpa [#allocation5], 1 }

</bundles_post_ra>
